<compile_context>
chip_gen: v5e
topology: v5e:2x2
jax: 0.10.0
libtpu: 0.0.40
codegen_flags: <defaults>
</compile_context>

<pallas_src>
import jax
import jax.numpy as jnp
import numpy as np
from jax.experimental import pallas as pl
from jax.experimental.pallas import tpu as pltpu


# --------------------------------------------------------------------------
# Primary path: zero-copy identity (no DMA at all).
# --------------------------------------------------------------------------
def _noop_kernel(x_ref, o_ref):
    # Output buffer IS the input buffer (aliased); nothing to compute or move.
    # touch() pins an ordering dependency so the aliased output materializes.
    pltpu.touch(o_ref)


def _identity_zero_copy(x):
    return pl.pallas_call(
        _noop_kernel,
        out_shape=jax.ShapeDtypeStruct(x.shape, x.dtype),
        in_specs=[pl.BlockSpec(memory_space=pl.ANY)],
        out_specs=pl.BlockSpec(memory_space=pl.ANY),
        input_output_aliases={0: 0},
        compiler_params=pltpu.CompilerParams(has_side_effects=True),
    )(x)


# --------------------------------------------------------------------------
# Fallback path: minimal-cost materialized copy (lane-dense, large tiles).
# --------------------------------------------------------------------------
def _copy_kernel(x_ref, o_ref):
    o_ref[...] = x_ref[...]


def _sublane_align(dtype):
    # Keep row tiles aligned to the native packed sublane tile:
    # 8 rows for 32-bit, 16 for bf16/f16, 32 for int8/fp8.
    itemsize = jnp.dtype(dtype).itemsize
    return {4: 8, 2: 16, 1: 32}.get(itemsize, 8)


def _identity_copy(x):
    shape, dtype = x.shape, x.dtype
    size = x.size
    itemsize = jnp.dtype(dtype).itemsize
    sub = _sublane_align(dtype)

    # Widen the lane dim: largest multiple of 128 (<= 4096) dividing the size
    # such that the remaining row count stays sublane-aligned -> unmasked,
    # long contiguous vst / DMA rows and fewer grid steps.
    lanes = None
    for cand in (4096, 2048, 1024, 512, 256, 128):
        if size % cand == 0 and (size // cand) % sub == 0:
            lanes = cand
            break

    if lanes is None:
        # Tiny / odd-sized arrays: single full-extent block (always legal
        # under the (8,128) rule because block dims == full array dims).
        flat = x.reshape(1, size)
        out = pl.pallas_call(
            _copy_kernel,
            out_shape=jax.ShapeDtypeStruct((1, size), dtype),
            in_specs=[pl.BlockSpec((1, size), lambda: (0, 0))],
            out_specs=pl.BlockSpec((1, size), lambda: (0, 0)),
            input_output_aliases={0: 0},
        )(flat)
        return out.reshape(shape)

    rows = size // lanes
    x2d = x.reshape(rows, lanes)

    # Target ~3 MiB per block so (in + out) x 2 buffers ~ 12 MiB, inside the
    # 1-4 MiB-per-block roofline regime yet under v5e's 16 MiB scoped VMEM.
    target_block_bytes = 3 * 1024 * 1024
    max_tile_rows = max(sub, (target_block_bytes // (lanes * itemsize)) // sub * sub)

    if rows <= max_tile_rows:
        tile_rows = rows
        padded_rows = rows
    else:
        # Largest sublane-aligned divisor of rows within the cap; if none,
        # pad rows up to a tile multiple instead of a full-extent fallback
        # (avoids whole-array VMEM residency on v7x's 64 MiB VMEM).
        tile_rows = None
        t = max_tile_rows
        while t >= sub:
            if rows % t == 0:
                tile_rows = t
                break
            t -= sub
        if tile_rows is None:
            tile_rows = max_tile_rows
        padded_rows = ((rows + tile_rows - 1) // tile_rows) * tile_rows
        if padded_rows != rows:
            x2d = jnp.pad(x2d, ((0, padded_rows - rows), (0, 0)))

    grid = (padded_rows // tile_rows,)
    out2d = pl.pallas_call(
        _copy_kernel,
        out_shape=jax.ShapeDtypeStruct((padded_rows, lanes), dtype),
        grid_spec=pltpu.PrefetchScalarGridSpec(
            num_scalar_prefetch=0,
            grid=grid,
            in_specs=[pl.BlockSpec((tile_rows, lanes), lambda i: (i, 0))],
            out_specs=pl.BlockSpec((tile_rows, lanes), lambda i: (i, 0)),
        ),
        input_output_aliases={0: 0},
        compiler_params=pltpu.CompilerParams(
            # Row axis is fully independent -> shard across both TensorCores
            # on v7x (bandwidth-bound, so expect tiling, not 2x, to matter).
            dimension_semantics=("parallel",),
        ),
    )(x2d)

    if padded_rows != rows:
        out2d = out2d[:rows]
    return out2d.reshape(shape)


# --------------------------------------------------------------------------
# Public wrapper: IdentityModel.forward
# --------------------------------------------------------------------------
def identity_forward(x):
    """Pallas implementation of IdentityModel.forward (returns x unchanged)."""
    if x.size == 0:
        return x
    try:
        # Zero data movement: aliased output, raw HBM refs, no-op body.
        return _identity_zero_copy(x)
    except Exception:
        # Safety net: minimal-cost materialized copy with optimized tiling.
        return _identity_copy(x)


if __name__ == "__main__":
    key = jax.random.PRNGKey(0)
    # Small NCHW input consistent with a conv-style model: batch=2, C=4, 16x16.
    x = jax.random.normal(key, (2, 4, 16, 16), dtype=jnp.float32)

    # Host snapshot taken BEFORE the call (the input buffer may be donated
    # to the aliased output).
    x_host = np.asarray(jax.device_get(x))

    y = identity_forward(x)
    y = jax.block_until_ready(y)

    assert y.shape == x_host.shape and y.dtype == x_host.dtype
    assert np.array_equal(np.asarray(jax.device_get(y)), x_host)
    print("KERNEL_OK")
</pallas_src>

<mosaic_0001>
module attributes {stable_mosaic.version = 11 : i64} {
  func.func @_noop_kernel(%arg0: memref<2x4x16x16xf32, #tpu.memory_space<any>>, %arg1: memref<2x4x16x16xf32, #tpu.memory_space<any>>) attributes {dimension_semantics = [], scalar_prefetch = 0 : i64, scratch_operands = 0 : i64, tpu.core_type = #tpu.core_type<tc>} {
    return
  }
}

module attributes {stable_mosaic.version = 11 : i64} {
  func.func @_copy_kernel(%arg0: i32, %arg1: memref<8x256xf32, #tpu.memory_space<vmem>>, %arg2: memref<8x256xf32, #tpu.memory_space<vmem>>) attributes {dimension_semantics = [#tpu.dimension_semantics<parallel>], iteration_bounds = array<i64: 1>, scalar_prefetch = 0 : i64, scratch_operands = 0 : i64, tpu.core_type = #tpu.core_type<tc>, window_params = [{transform_indices = @transform_0, window_bounds = array<i64: 8, 256>}, {transform_indices = @transform_1, window_bounds = array<i64: 8, 256>}]} {
    %c0 = arith.constant 0 : index
    %c0_0 = arith.constant 0 : index
    %0 = vector.load %arg1[%c0, %c0_0] : memref<8x256xf32, #tpu.memory_space<vmem>>, vector<8x256xf32>
    %c0_1 = arith.constant 0 : index
    %c0_2 = arith.constant 0 : index
    %1 = vector.load %arg2[%c0_1, %c0_2] : memref<8x256xf32, #tpu.memory_space<vmem>>, vector<8x256xf32>
    tpu.vector_store %arg2[%c0_1, %c0_2], %0 {strides = array<i32>} : memref<8x256xf32, #tpu.memory_space<vmem>>, vector<8x256xf32>,
    return
  }
  func.func @transform_0(%arg0: i32) -> (i32, i32) {
    %c0_i32 = arith.constant 0 : i32
    %c0_i32_0 = arith.constant 0 : i32
    return %arg0, %c0_i32 : i32, i32
  }
  func.func @transform_1(%arg0: i32) -> (i32, i32) {
    %c0_i32 = arith.constant 0 : i32
    %c0_i32_0 = arith.constant 0 : i32
    return %arg0, %c0_i32 : i32, i32
  }
}

</mosaic_0001>

<bundles_post_ra>
// kernel: tpu_custom_call.1
= control target key start
LH: loop header
LB: loop body
LE: loop exit
PB: predicated region body
PF: predicated region fallthrough
CT: control target
= control target key end

     0   :  { %s16_s0 = inlined_call_operand.hbm [shape: f32[2,4,16,16], index: 0, kind: input, shape index: {}, may-alias: {0,1}]   ;;  %s17_s1 = inlined_call_operand.hbm [shape: f32[2,4,16,16], index: 1, kind: output, shape index: {}, may-alias: {0,1}]  }

// kernel: tpu_custom_call.1
= control target key start
LH: loop header
LB: loop body
LE: loop exit
PB: predicated region body
PF: predicated region fallthrough
CT: control target
= control target key end

     0   :  { %6 = vsyncpa [#allocation3], 0  ;;  %s116_s0 = inlined_call_operand.hbm [shape: f32[8,256], index: 0, kind: input, shape index: {}, may-alias: {0,1}]   ;;  %s117_s1 = inlined_call_operand.hbm [shape: f32[8,256], index: 1, kind: output, shape index: {}, may-alias: {0,1}]  }
   0x1   :  { %7 = vsyncpa [#allocation4], 0  ;;  %s13_s8 = sshll.u32 %s116_s0, 4  ;;  %s98_s9 = smov [#allocation2]   ;;  %s14_s8 = int_to_ptr.hbm [resolvable:$true] %s13_s8 }
   0x2   :  { %s15_s10 = sshll.u32 %s98_s9, 4  ;;  %s16_s10 = int_to_ptr.vmem [resolvable:$true] %s15_s10 }
   0x3   :  { %18 = dma.hbm_to_vmem [thread:$0]  %s14_s8, 256, %s16_s10, [#allocation3]  }
   0x4   :  { %94 = dma.done.wait [#allocation3], 256  }
   0x5   :  { %95 = vsyncadd [#allocation3], 4294967040  ;;  %s99_s11 = smov [#allocation5]   ;;  %s34_s15 = sshll.u32 %s117_s1, 4  ;;  %v23_v0 = vld [vmem:[#allocation2] sm:$0xff]  ;;  %v24_v1 = vld [vmem:[#allocation2 + $0x8] sm:$0xff]  ;;  %s35_s15 = int_to_ptr.hbm [resolvable:$true] %s34_s15 }
   0x6   :  { %s32_s12 = sshll.u32 %s99_s11, 4  ;;  %25 = vst [vmem:[#allocation5] sm:$0xff] %v23_v0  ;;  %s33_s12 = int_to_ptr.vmem [resolvable:$true] %s32_s12 }
   0x7   :  { %26 = vst [vmem:[#allocation5 + $0x8] sm:$0xff] %v24_v1 }
   0x8   :  { %37 = dma.vmem_to_hbm [thread:$0]  %s33_s12, 256, %s35_s15, [#allocation4]  }
   0x9   :  { %96 = dma.done.wait [#allocation4], 256  }
   0xa   :  { %97 = vsyncadd [#allocation4], 4294967040 }
   0xb   :  { %42 = vsyncpa [#allocation3], 1 }
   0xc   :  { %43 = vsyncpa [#allocation4], 1 }

</bundles_post_ra>
